<compile_context>
chip_gen: v6e
topology: v6e:2x2x1
jax: 0.10.0
libtpu: 0.0.40
codegen_flags: <defaults>
</compile_context>

<pallas_src>
import functools

import jax
import jax.numpy as jnp
from jax.experimental import pallas as pl
from jax.experimental.pallas import tpu as pltpu

# ---- hyperparameters (match EmbeddingDistance defaults) ---------------------
NORMALIZE = True
ENERGY_RATIO = 1.0
LJR_RATIO = 1.0
LJR_POWER = 12
LJR_SCALE = 0.8
EMBEDDING_RATIO = 0.1
MODE = "min"

# First entries of the module's element_energy table (z values here are <= 8,
# so only the leading slice is ever indexed; rest of the table is unused).
ELEMENT_ENERGY = [
    -1, -3.392726045, -0.00905951, -1.9089228666666667, -3.739412865,
    -6.679391770833334, -9.2286654925, -8.336494925, -4.947961005,
    -1.9114789675, -0.02593678, -1.3225252934482759, -1.60028005,
    -3.74557583, -5.42531803, -5.413302506666667,
]


def _int_pow(x, p):
    """Static exponentiation-by-squaring: stays on the VPU as ~log2(p) muls."""
    result = None
    base = x
    while p:
        if p & 1:
            result = base if result is None else result * base
        p >>= 1
        if p:
            base = base * base
    return result


# ---- single fused kernel -----------------------------------------------------
# grid = (M // tile_m,) over the reference set (reduction axis, "arbitrary").
def _fused_kernel(x_ref, et_ref, e2_ref, rmins_ref, ew_ref, eg_ref,
                  pe_ref, off_ref, na_ref, out_ref, acc_ref, *, m_total):
    mi = pl.program_id(0)
    n_m = pl.num_programs(0)

    x = x_ref[...]                                   # (N, D) native dtype -> MXU
    n = x.shape[0]
    b = pe_ref.shape[0]

    # ---- running reduction state (VMEM scratch, persists across M blocks) ---
    @pl.when(mi == 0)
    def _init():
        if MODE == "min":
            acc_ref[...] = jnp.full_like(acc_ref, jnp.inf)
        else:
            acc_ref[...] = jnp.zeros_like(acc_ref)

    # ---- cdist block: ||x - e||^2 = ||x||^2 + ||e||^2 - 2 x.e ----------------
    xf = x.astype(jnp.float32)
    x2 = jnp.sum(xf * xf, axis=1, keepdims=True)                    # (N, 1) f32
    # Fold the -2 into the (N, D) LHS (D << M) so the (N, tile_m) epilogue is
    # adds only. Done in-kernel (wrapper pre-scaling is an un-hidden XLA op).
    xe = jax.lax.dot_general(x * (-2.0), et_ref[...],
                             (((1,), (0,)), ((), ())),
                             preferred_element_type=jnp.float32)    # (N, tile_m)
    d2 = x2 + e2_ref[...] + xe                                      # (N, tile_m)

    if MODE == "min":
        # clamp-at-0 and sqrt are deferred past the running min (monotone).
        acc_ref[...] = jnp.minimum(acc_ref[...],
                                   jnp.min(d2, axis=-1, keepdims=True))
    else:
        # clamp must stay per-element for the mean path.
        d = jnp.sqrt(jnp.maximum(d2, 0.0))
        acc_ref[...] += jnp.sum(jnp.sum(d, axis=0, keepdims=True),
                                axis=1, keepdims=True)              # (1, 1)

    # ---- finalize on the last M block ----------------------------------------
    @pl.when(mi == n_m - 1)
    def _finalize():
        if MODE == "min":
            dmin = jnp.sqrt(jnp.maximum(acc_ref[...], 0.0))          # (N, 1)
            emb = jnp.sum(dmin, axis=0, keepdims=True) * (1.0 / n)   # (1, 1)
        else:
            emb = acc_ref[...] * (1.0 / (n * m_total))               # (1, 1)

        # ---- Lennard-Jones repulsion + per-graph segment sum -----------------
        # padded edges carry rmins=0, ew=1, graph id=-1 -> contribute exactly 0.
        # max(r, 1)^p - 1 == where(rmins <= ew, 1, (rmins/ew)^p) - 1.
        r = jnp.maximum(rmins_ref[...] / ew_ref[...], 1.0)           # (R, 128)
        # TODO(synk): rmins * pl.reciprocal(ew, approx=True) would move the
        # divide to the idle EUP slot, but r^12 amplifies its relative error
        # ~12x -- keep the exact divide until validated against torch.
        diff = _int_pow(r, LJR_POWER) - 1.0                          # (R, 128)
        gid = jax.lax.broadcasted_iota(jnp.int32, (b,) + diff.shape, 0)
        contrib = jnp.where(eg_ref[...][None, :, :] == gid,
                            diff[None, :, :], 0.0)                   # (B, R, 128)
        ljr = jnp.sum(jnp.sum(contrib, axis=-1), axis=-1,
                      keepdims=True)                                 # (B, 1)

        # ---- energy normalization + loss combination -------------------------
        pe = pe_ref[...]                                             # (B, 1)
        if NORMALIZE:
            pe = (pe + off_ref[...]) / na_ref[...]
        # emb is a batch-level scalar broadcast to every graph row (matches the
        # torch reference's (1,) broadcast).
        loss = ENERGY_RATIO * pe - EMBEDDING_RATIO * emb + LJR_RATIO * ljr

        # pack the four outputs into one lane-dense (B, 128) slab:
        # lane 0 = loss, 1 = normalized pe, 2 = -embedding_loss, 3 = ljr.
        lane = jax.lax.broadcasted_iota(jnp.int32, (b, 128), 1)
        out_ref[...] = (jnp.where(lane == 0, loss, 0.0)
                        + jnp.where(lane == 1, pe, 0.0)
                        + jnp.where(lane == 2, -emb, 0.0)
                        + jnp.where(lane == 3, ljr, 0.0))


# ---- static reference preprocessing (hoisted to init time) ------------------
def prepare_reference(ref_embeddings):
    """Pre-transpose to (D, M) (MXU-ready RHS) and precompute ||e||^2 once."""
    ef = ref_embeddings.astype(jnp.float32)
    e2 = jnp.sum(ef * ef, axis=1).reshape(1, -1)          # (1, M) f32
    e_t = jnp.swapaxes(ref_embeddings, 0, 1)              # (D, M), native dtype
    return e_t, e2


def _pick_tile_m(m, tile_max=2048):
    """Largest M tile that divides M, is 128-aligned and <= tile_max.

    tile_max=2048 keeps (N x tile_m) f32 + double-buffered (D, tile_m) blocks
    well inside v7x's scoped-default VMEM; v6e can roughly double it (or keep
    the whole table resident); on v5e also raise vmem_limit_bytes above the
    16 MiB scoped default when tiling for real shapes.
    """
    if m % 128 != 0 or m <= tile_max:
        return m
    t = 128
    while t * 2 <= tile_max and m % (t * 2) == 0:
        t *= 2
    return t


# ---- wrapper: glue (gathers / padding) + one gridded pallas_call -------------
def embedding_distance_forward(potential_energy, embeddings, z, batch_idx,
                               n_atoms, edge_index, edge_weight,
                               ref_embeddings_t, ref_sq_norms, lj_rmins):
    B = int(n_atoms.shape[0])
    N, D = embeddings.shape
    M = int(ref_embeddings_t.shape[1])
    E = int(edge_weight.shape[0])

    # set_norm_offset: offset[i] = -sum_j element_energy[z_j] for atoms of graph i
    elem_e = jnp.asarray(ELEMENT_ENERGY, dtype=jnp.float32)
    offset = -(jnp.zeros((B,), jnp.float32).at[batch_idx].add(elem_e[z]))
    offset = offset.reshape(B, 1)

    # per-edge gathers (data-dependent indexing kept as JAX glue)
    src, dst = edge_index[0], edge_index[1]
    rmins = lj_rmins[z[src] - 1, z[dst] - 1].astype(jnp.float32)         # (E,)
    edge_graph = batch_idx[src].astype(jnp.int32)                        # (E,)

    # pack per-edge data into sublane-dense (R, 128) blocks, R multiple of 8.
    R = max(8, (((E + 127) // 128 + 7) // 8) * 8)
    pad = R * 128 - E
    rmins_p = jnp.pad(rmins, (0, pad)).reshape(R, 128)                        # pad 0
    ew_p = jnp.pad(edge_weight.astype(jnp.float32), (0, pad),
                   constant_values=1.0).reshape(R, 128)                       # pad 1
    eg_p = jnp.pad(edge_graph, (0, pad), constant_values=-1).reshape(R, 128)  # pad -1

    pe = potential_energy.reshape(B, 1).astype(jnp.float32)
    na = n_atoms.astype(jnp.float32).reshape(B, 1)

    tile_m = _pick_tile_m(M)
    n_m = M // tile_m

    grid_spec = pltpu.PrefetchScalarGridSpec(
        num_scalar_prefetch=0,
        grid=(n_m,),
        in_specs=[
            pl.BlockSpec((N, D), lambda m: (0, 0)),        # model embeddings (resident)
            pl.BlockSpec((D, tile_m), lambda m: (0, m)),   # reference embeddings^T
            pl.BlockSpec((1, tile_m), lambda m: (0, m)),   # ||e||^2
            pl.BlockSpec((R, 128), lambda m: (0, 0)),      # lj rmins (per edge)
            pl.BlockSpec((R, 128), lambda m: (0, 0)),      # edge weights
            pl.BlockSpec((R, 128), lambda m: (0, 0)),      # edge -> graph ids (int32)
            pl.BlockSpec((B, 1), lambda m: (0, 0)),        # potential energy
            pl.BlockSpec((B, 1), lambda m: (0, 0)),        # normalization offsets
            pl.BlockSpec((B, 1), lambda m: (0, 0)),        # n_atoms
        ],
        out_specs=pl.BlockSpec((B, 128), lambda m: (0, 0)),
        scratch_shapes=[
            pltpu.VMEM((N, 1) if MODE == "min" else (1, 1), jnp.float32),
        ],
    )

    out = pl.pallas_call(
        functools.partial(_fused_kernel, m_total=M),
        out_shape=jax.ShapeDtypeStruct((B, 128), jnp.float32),
        grid_spec=grid_spec,
        compiler_params=pltpu.CompilerParams(
            dimension_semantics=("arbitrary",)),   # M axis is a reduction
    )(embeddings, ref_embeddings_t, ref_sq_norms, rmins_p, ew_p, eg_p,
      pe, offset, na)

    # matches torch return: (loss, potential_energy(normalized in place),
    #                        -embedding_loss, ljr)
    loss = out[:, 0:1]
    pe_norm = out[:, 1:2]
    neg_emb = out[0:1, 2:3]
    ljr = out[:, 3:4]
    return loss, pe_norm, neg_emb, ljr


# ---- pure-JAX reference (mirrors the torch forward) for validation -----------
def _reference(potential_energy, embeddings, z, batch_idx, n_atoms,
               edge_index, edge_weight, ref_embeddings, lj_rmins):
    B = n_atoms.shape[0]
    elem_e = jnp.asarray(ELEMENT_ENERGY, jnp.float32)
    offset = -(jnp.zeros((B,), jnp.float32).at[batch_idx].add(elem_e[z]))
    pe = potential_energy.reshape(B, 1)
    if NORMALIZE:
        pe = (pe + offset[:, None]) / n_atoms.astype(jnp.float32)[:, None]
    src, dst = edge_index[0], edge_index[1]
    rmins = lj_rmins[z[src] - 1, z[dst] - 1].astype(jnp.float32)
    rep = jnp.where(rmins <= edge_weight, 1.0,
                    (rmins / edge_weight) ** LJR_POWER)
    eg = batch_idx[src]
    ljr = jnp.zeros((B,), jnp.float32).at[eg].add(rep - 1.0)[:, None]
    d = jnp.sqrt(jnp.sum(
        (embeddings[:, None, :] - ref_embeddings[None, :, :]) ** 2, axis=-1))
    if MODE == "min":
        emb = jnp.mean(jnp.min(d, axis=-1))
    else:
        emb = jnp.mean(d)
    loss = ENERGY_RATIO * pe - EMBEDDING_RATIO * emb + LJR_RATIO * ljr
    return loss, pe, jnp.full((1, 1), -emb, jnp.float32), ljr


if __name__ == "__main__":
    key = jax.random.PRNGKey(0)
    B = 4                # graphs in the batch
    n_atoms = jnp.array([3, 4, 2, 3], dtype=jnp.int32)
    A = 12               # total atoms
    Zmax = 8             # max atomic number used
    D = 32               # embedding dim
    M = 16               # number of reference embeddings
    E = 64               # number of edges

    k1, k2, k3, k4, k5, k6, k7 = jax.random.split(key, 7)
    z = jax.random.randint(k1, (A,), 1, Zmax + 1)                        # atomic numbers
    batch_idx = jnp.repeat(jnp.arange(B), n_atoms, total_repeat_length=A)
    edge_index = jax.random.randint(k2, (2, E), 0, A)
    edge_weight = jax.random.uniform(k3, (E,), minval=0.5, maxval=3.0)
    embeddings = jax.random.normal(k4, (B, D), dtype=jnp.float32)        # model_output['embeddings']
    potential_energy = 5.0 * jax.random.normal(k5, (B, 1), dtype=jnp.float32)
    ref_embeddings = jax.random.normal(k6, (M, D), dtype=jnp.float32)    # self.embeddings
    base = jax.random.uniform(k7, (Zmax,), minval=1.0, maxval=2.5)
    # synthetic symmetric lj_rmins table (stands in for lj_rmins.npy), pre-scaled
    lj_rmins = (0.5 * (base[:, None] + base[None, :])) * LJR_SCALE       # (Zmax, Zmax)

    # static reference preprocessing, done once at module init time
    e_t, e2 = prepare_reference(ref_embeddings)

    outs = embedding_distance_forward(potential_energy, embeddings, z, batch_idx,
                                      n_atoms, edge_index, edge_weight,
                                      e_t, e2, lj_rmins)
    jax.block_until_ready(outs)

    # correctness check against a pure-JAX mirror of the torch forward
    refs = _reference(potential_energy, embeddings, z, batch_idx, n_atoms,
                      edge_index, edge_weight, ref_embeddings, lj_rmins)
    names = ("loss", "potential_energy", "neg_embedding_loss", "ljr")
    for name, got, want in zip(names, outs, refs):
        if not bool(jnp.allclose(got, want, rtol=1e-4, atol=1e-4)):
            raise AssertionError(f"{name} mismatch:\n{got}\nvs\n{want}")

    print("KERNEL_OK")
</pallas_src>

<mosaic_0001>
module attributes {stable_mosaic.version = 11 : i64} {
  func.func @_fused_kernel(%arg0: i32, %arg1: memref<4x32xf32, #tpu.memory_space<vmem>>, %arg2: memref<32x16xf32, #tpu.memory_space<vmem>>, %arg3: memref<1x16xf32, #tpu.memory_space<vmem>>, %arg4: memref<8x128xf32, #tpu.memory_space<vmem>>, %arg5: memref<8x128xf32, #tpu.memory_space<vmem>>, %arg6: memref<8x128xi32, #tpu.memory_space<vmem>>, %arg7: memref<4x1xf32, #tpu.memory_space<vmem>>, %arg8: memref<4x1xf32, #tpu.memory_space<vmem>>, %arg9: memref<4x1xf32, #tpu.memory_space<vmem>>, %arg10: memref<4x128xf32, #tpu.memory_space<vmem>>, %arg11: memref<4x1xf32, #tpu.memory_space<vmem>>) attributes {dimension_semantics = [#tpu.dimension_semantics<arbitrary>], iteration_bounds = array<i64: 1>, scalar_prefetch = 0 : i64, scratch_operands = 1 : i64, tpu.core_type = #tpu.core_type<tc>, window_params = [{pipeline_mode = #tpu.pipeline_mode<synchronous>, transform_indices = @transform_0, window_bounds = array<i64: 4, 32>}, {transform_indices = @transform_1, window_bounds = array<i64: 32, 16>}, {transform_indices = @transform_2, window_bounds = array<i64: 1, 16>}, {pipeline_mode = #tpu.pipeline_mode<synchronous>, transform_indices = @transform_3, window_bounds = array<i64: 8, 128>}, {pipeline_mode = #tpu.pipeline_mode<synchronous>, transform_indices = @transform_4, window_bounds = array<i64: 8, 128>}, {pipeline_mode = #tpu.pipeline_mode<synchronous>, transform_indices = @transform_5, window_bounds = array<i64: 8, 128>}, {pipeline_mode = #tpu.pipeline_mode<synchronous>, transform_indices = @transform_6, window_bounds = array<i64: 4, 1>}, {pipeline_mode = #tpu.pipeline_mode<synchronous>, transform_indices = @transform_7, window_bounds = array<i64: 4, 1>}, {pipeline_mode = #tpu.pipeline_mode<synchronous>, transform_indices = @transform_8, window_bounds = array<i64: 4, 1>}, {pipeline_mode = #tpu.pipeline_mode<synchronous>, transform_indices = @transform_9, window_bounds = array<i64: 4, 128>}]} {
    %c0 = arith.constant 0 : index
    %c0_0 = arith.constant 0 : index
    %0 = vector.load %arg1[%c0, %c0_0] : memref<4x32xf32, #tpu.memory_space<vmem>>, vector<4x32xf32>
    %c0_i32 = arith.constant 0 : i32
    %1 = arith.cmpi eq, %arg0, %c0_i32 : i32
    %2 = arith.extui %1 : i1 to i32
    %c0_i32_1 = arith.constant 0 : i32
    %3 = arith.cmpi ne, %2, %c0_i32_1 : i32
    scf.if %3 {
      %cst_15 = arith.constant 0x7F800000 : f32
      %24 = vector.broadcast %cst_15 : f32 to vector<4x1xf32>
      %c0_16 = arith.constant 0 : index
      %c0_17 = arith.constant 0 : index
      %25 = vector.load %arg11[%c0_16, %c0_17] : memref<4x1xf32, #tpu.memory_space<vmem>>, vector<4x1xf32>
      tpu.vector_store %arg11[%c0_16, %c0_17], %24 {strides = array<i32>} : memref<4x1xf32, #tpu.memory_space<vmem>>, vector<4x1xf32>,
    } else {
    }
    %4 = arith.mulf %0, %0 : vector<4x32xf32>
    %cst = arith.constant dense<0.000000e+00> : vector<4xf32>
    %5 = vector.multi_reduction <add>, %4, %cst [1] : vector<4x32xf32> to vector<4xf32>
    %6 = vector.shape_cast %5 : vector<4xf32> to vector<4x1xf32>
    %cst_2 = arith.constant -2.000000e+00 : f32
    %7 = vector.broadcast %cst_2 : f32 to vector<4x32xf32>
    %8 = arith.mulf %0, %7 : vector<4x32xf32>
    %c0_3 = arith.constant 0 : index
    %c0_4 = arith.constant 0 : index
    %9 = vector.load %arg2[%c0_3, %c0_4] : memref<32x16xf32, #tpu.memory_space<vmem>>, vector<32x16xf32>
    %cst_5 = arith.constant dense<0.000000e+00> : vector<4x16xf32>
    %10 = tpu.matmul %8, %9, %cst_5 {dimension_numbers = #tpu.dot_dimension_numbers<[1], [0], [0], [1], [0, 0, 1, 1], [], []>} : vector<4x32xf32>, vector<32x16xf32>, vector<4x16xf32> -> vector<4x16xf32>
    %c0_6 = arith.constant 0 : index
    %c0_7 = arith.constant 0 : index
    %11 = vector.load %arg3[%c0_6, %c0_7] : memref<1x16xf32, #tpu.memory_space<vmem>>, vector<1x16xf32>
    %12 = vector.broadcast %6 : vector<4x1xf32> to vector<4x16xf32>
    %13 = vector.broadcast %11 : vector<1x16xf32> to vector<4x16xf32>
    %14 = arith.addf %12, %13 : vector<4x16xf32>
    %15 = arith.addf %14, %10 : vector<4x16xf32>
    %c0_8 = arith.constant 0 : index
    %c0_9 = arith.constant 0 : index
    %16 = vector.load %arg11[%c0_8, %c0_9] : memref<4x1xf32, #tpu.memory_space<vmem>>, vector<4x1xf32>
    %cst_10 = arith.constant dense<0x7F800000> : vector<4xf32>
    %17 = vector.multi_reduction <minimumf>, %15, %cst_10 [1] : vector<4x16xf32> to vector<4xf32>
    %18 = vector.shape_cast %17 : vector<4xf32> to vector<4x1xf32>
    %19 = arith.minimumf %16, %18 : vector<4x1xf32>
    %c0_11 = arith.constant 0 : index
    %c0_12 = arith.constant 0 : index
    %20 = vector.load %arg11[%c0_11, %c0_12] : memref<4x1xf32, #tpu.memory_space<vmem>>, vector<4x1xf32>
    tpu.vector_store %arg11[%c0_11, %c0_12], %19 {strides = array<i32>} : memref<4x1xf32, #tpu.memory_space<vmem>>, vector<4x1xf32>,
    %c0_i32_13 = arith.constant 0 : i32
    %21 = arith.cmpi eq, %arg0, %c0_i32_13 : i32
    %22 = arith.extui %21 : i1 to i32
    %c0_i32_14 = arith.constant 0 : i32
    %23 = arith.cmpi ne, %22, %c0_i32_14 : i32
    scf.if %23 {
      %c0_15 = arith.constant 0 : index
      %c0_16 = arith.constant 0 : index
      %24 = vector.load %arg11[%c0_15, %c0_16] : memref<4x1xf32, #tpu.memory_space<vmem>>, vector<4x1xf32>
      %cst_17 = arith.constant 0.000000e+00 : f32
      %25 = vector.broadcast %cst_17 : f32 to vector<4x1xf32>
      %26 = arith.maximumf %24, %25 : vector<4x1xf32>
      %27 = math.sqrt %26 : vector<4x1xf32>
      %cst_18 = arith.constant dense<0.000000e+00> : vector<1xf32>
      %28 = vector.multi_reduction <add>, %27, %cst_18 [0] : vector<4x1xf32> to vector<1xf32>
      %29 = vector.shape_cast %28 : vector<1xf32> to vector<1x1xf32>
      %cst_19 = arith.constant 2.500000e-01 : f32
      %30 = vector.broadcast %cst_19 : f32 to vector<1x1xf32>
      %31 = arith.mulf %29, %30 : vector<1x1xf32>
      %c0_20 = arith.constant 0 : index
      %c0_21 = arith.constant 0 : index
      %32 = vector.load %arg4[%c0_20, %c0_21] : memref<8x128xf32, #tpu.memory_space<vmem>>, vector<8x128xf32>
      %c0_22 = arith.constant 0 : index
      %c0_23 = arith.constant 0 : index
      %33 = vector.load %arg5[%c0_22, %c0_23] : memref<8x128xf32, #tpu.memory_space<vmem>>, vector<8x128xf32>
      %34 = arith.divf %32, %33 : vector<8x128xf32>
      %cst_24 = arith.constant 1.000000e+00 : f32
      %35 = vector.broadcast %cst_24 : f32 to vector<8x128xf32>
      %36 = arith.maximumf %34, %35 : vector<8x128xf32>
      %37 = arith.mulf %36, %36 : vector<8x128xf32>
      %38 = arith.mulf %37, %37 : vector<8x128xf32>
      %39 = arith.mulf %38, %38 : vector<8x128xf32>
      %40 = arith.mulf %38, %39 : vector<8x128xf32>
      %cst_25 = arith.constant 1.000000e+00 : f32
      %41 = vector.broadcast %cst_25 : f32 to vector<8x128xf32>
      %42 = arith.subf %40, %41 : vector<8x128xf32>
      %43 = tpu.iota {dimensions = array<i32: 0>} : vector<4x8x128xi32>
      %c0_26 = arith.constant 0 : index
      %c0_27 = arith.constant 0 : index
      %44 = vector.load %arg6[%c0_26, %c0_27] : memref<8x128xi32, #tpu.memory_space<vmem>>, vector<8x128xi32>
      %45 = vector.shape_cast %44 : vector<8x128xi32> to vector<1x8x128xi32>
      %46 = vector.broadcast %45 : vector<1x8x128xi32> to vector<4x8x128xi32>
      %47 = arith.cmpi eq, %46, %43 : vector<4x8x128xi32>
      %48 = vector.shape_cast %42 : vector<8x128xf32> to vector<1x8x128xf32>
      %cst_28 = arith.constant 0.000000e+00 : f32
      %49 = vector.shape_cast %48 : vector<1x8x128xf32> to vector<1x8x128xf32>
      %50 = vector.broadcast %49 : vector<1x8x128xf32> to vector<4x8x128xf32>
      %51 = vector.broadcast %cst_28 : f32 to vector<4x8x128xf32>
      %52 = arith.select %47, %50, %51 : vector<4x8x128xi1>, vector<4x8x128xf32>
      %cst_29 = arith.constant dense<0.000000e+00> : vector<4x8xf32>
      %53 = vector.multi_reduction <add>, %52, %cst_29 [2] : vector<4x8x128xf32> to vector<4x8xf32>
      %cst_30 = arith.constant dense<0.000000e+00> : vector<4xf32>
      %54 = vector.multi_reduction <add>, %53, %cst_30 [1] : vector<4x8xf32> to vector<4xf32>
      %55 = vector.shape_cast %54 : vector<4xf32> to vector<4x1xf32>
      %c0_31 = arith.constant 0 : index
      %c0_32 = arith.constant 0 : index
      %56 = vector.load %arg7[%c0_31, %c0_32] : memref<4x1xf32, #tpu.memory_space<vmem>>, vector<4x1xf32>
      %c0_33 = arith.constant 0 : index
      %c0_34 = arith.constant 0 : index
      %57 = vector.load %arg8[%c0_33, %c0_34] : memref<4x1xf32, #tpu.memory_space<vmem>>, vector<4x1xf32>
      %58 = arith.addf %56, %57 : vector<4x1xf32>
      %c0_35 = arith.constant 0 : index
      %c0_36 = arith.constant 0 : index
      %59 = vector.load %arg9[%c0_35, %c0_36] : memref<4x1xf32, #tpu.memory_space<vmem>>, vector<4x1xf32>
      %60 = arith.divf %58, %59 : vector<4x1xf32>
      %cst_37 = arith.constant 1.000000e+00 : f32
      %61 = vector.broadcast %cst_37 : f32 to vector<4x1xf32>
      %62 = arith.mulf %61, %60 : vector<4x1xf32>
      %cst_38 = arith.constant 1.000000e-01 : f32
      %63 = vector.broadcast %cst_38 : f32 to vector<1x1xf32>
      %64 = arith.mulf %63, %31 : vector<1x1xf32>
      %65 = vector.broadcast %64 : vector<1x1xf32> to vector<4x1xf32>
      %66 = arith.subf %62, %65 : vector<4x1xf32>
      %cst_39 = arith.constant 1.000000e+00 : f32
      %67 = vector.broadcast %cst_39 : f32 to vector<4x1xf32>
      %68 = arith.mulf %67, %55 : vector<4x1xf32>
      %69 = arith.addf %66, %68 : vector<4x1xf32>
      %70 = tpu.iota {dimensions = array<i32: 1>} : vector<4x128xi32>
      %c0_i32_40 = arith.constant 0 : i32
      %71 = vector.broadcast %c0_i32_40 : i32 to vector<4x128xi32>
      %72 = arith.cmpi eq, %70, %71 : vector<4x128xi32>
      %cst_41 = arith.constant 0.000000e+00 : f32
      %73 = vector.shape_cast %69 : vector<4x1xf32> to vector<4x1xf32>
      %74 = vector.broadcast %73 : vector<4x1xf32> to vector<4x128xf32>
      %75 = vector.broadcast %cst_41 : f32 to vector<4x128xf32>
      %76 = arith.select %72, %74, %75 : vector<4x128xi1>, vector<4x128xf32>
      %c1_i32 = arith.constant 1 : i32
      %77 = vector.broadcast %c1_i32 : i32 to vector<4x128xi32>
      %78 = arith.cmpi eq, %70, %77 : vector<4x128xi32>
      %cst_42 = arith.constant 0.000000e+00 : f32
      %79 = vector.shape_cast %60 : vector<4x1xf32> to vector<4x1xf32>
      %80 = vector.broadcast %79 : vector<4x1xf32> to vector<4x128xf32>
      %81 = vector.broadcast %cst_42 : f32 to vector<4x128xf32>
      %82 = arith.select %78, %80, %81 : vector<4x128xi1>, vector<4x128xf32>
      %83 = arith.addf %76, %82 : vector<4x128xf32>
      %c2_i32 = arith.constant 2 : i32
      %84 = vector.broadcast %c2_i32 : i32 to vector<4x128xi32>
      %85 = arith.cmpi eq, %70, %84 : vector<4x128xi32>
      %cst_43 = arith.constant 0.000000e+00 : f32
      %86 = vector.broadcast %cst_43 : f32 to vector<1x1xf32>
      %87 = arith.subf %86, %31 : vector<1x1xf32>
      %cst_44 = arith.constant 0.000000e+00 : f32
      %88 = vector.shape_cast %87 : vector<1x1xf32> to vector<1x1xf32>
      %89 = vector.broadcast %88 : vector<1x1xf32> to vector<4x128xf32>
      %90 = vector.broadcast %cst_44 : f32 to vector<4x128xf32>
      %91 = arith.select %85, %89, %90 : vector<4x128xi1>, vector<4x128xf32>
      %92 = arith.addf %83, %91 : vector<4x128xf32>
      %c3_i32 = arith.constant 3 : i32
      %93 = vector.broadcast %c3_i32 : i32 to vector<4x128xi32>
      %94 = arith.cmpi eq, %70, %93 : vector<4x128xi32>
      %cst_45 = arith.constant 0.000000e+00 : f32
      %95 = vector.shape_cast %55 : vector<4x1xf32> to vector<4x1xf32>
      %96 = vector.broadcast %95 : vector<4x1xf32> to vector<4x128xf32>
      %97 = vector.broadcast %cst_45 : f32 to vector<4x128xf32>
      %98 = arith.select %94, %96, %97 : vector<4x128xi1>, vector<4x128xf32>
      %99 = arith.addf %92, %98 : vector<4x128xf32>
      %c0_46 = arith.constant 0 : index
      %c0_47 = arith.constant 0 : index
      %100 = vector.load %arg10[%c0_46, %c0_47] : memref<4x128xf32, #tpu.memory_space<vmem>>, vector<4x128xf32>
      tpu.vector_store %arg10[%c0_46, %c0_47], %99 {strides = array<i32>} : memref<4x128xf32, #tpu.memory_space<vmem>>, vector<4x128xf32>,
    } else {
    }
    return
  }
  func.func @transform_0(%arg0: i32) -> (i32, i32) {
    %c0_i32 = arith.constant 0 : i32
    %c0_i32_0 = arith.constant 0 : i32
    %c0_i32_1 = arith.constant 0 : i32
    return %c0_i32, %c0_i32_0 : i32, i32
  }
  func.func @transform_1(%arg0: i32) -> (i32, i32) {
    %c0_i32 = arith.constant 0 : i32
    %c0_i32_0 = arith.constant 0 : i32
    return %c0_i32, %arg0 : i32, i32
  }
  func.func @transform_2(%arg0: i32) -> (i32, i32) {
    %c0_i32 = arith.constant 0 : i32
    %c0_i32_0 = arith.constant 0 : i32
    return %c0_i32, %arg0 : i32, i32
  }
  func.func @transform_3(%arg0: i32) -> (i32, i32) {
    %c0_i32 = arith.constant 0 : i32
    %c0_i32_0 = arith.constant 0 : i32
    %c0_i32_1 = arith.constant 0 : i32
    return %c0_i32, %c0_i32_0 : i32, i32
  }
  func.func @transform_4(%arg0: i32) -> (i32, i32) {
    %c0_i32 = arith.constant 0 : i32
    %c0_i32_0 = arith.constant 0 : i32
    %c0_i32_1 = arith.constant 0 : i32
    return %c0_i32, %c0_i32_0 : i32, i32
  }
  func.func @transform_5(%arg0: i32) -> (i32, i32) {
    %c0_i32 = arith.constant 0 : i32
    %c0_i32_0 = arith.constant 0 : i32
    %c0_i32_1 = arith.constant 0 : i32
    return %c0_i32, %c0_i32_0 : i32, i32
  }
  func.func @transform_6(%arg0: i32) -> (i32, i32) {
    %c0_i32 = arith.constant 0 : i32
    %c0_i32_0 = arith.constant 0 : i32
    %c0_i32_1 = arith.constant 0 : i32
    return %c0_i32, %c0_i32_0 : i32, i32
  }
  func.func @transform_7(%arg0: i32) -> (i32, i32) {
    %c0_i32 = arith.constant 0 : i32
    %c0_i32_0 = arith.constant 0 : i32
    %c0_i32_1 = arith.constant 0 : i32
    return %c0_i32, %c0_i32_0 : i32, i32
  }
  func.func @transform_8(%arg0: i32) -> (i32, i32) {
    %c0_i32 = arith.constant 0 : i32
    %c0_i32_0 = arith.constant 0 : i32
    %c0_i32_1 = arith.constant 0 : i32
    return %c0_i32, %c0_i32_0 : i32, i32
  }
  func.func @transform_9(%arg0: i32) -> (i32, i32) {
    %c0_i32 = arith.constant 0 : i32
    %c0_i32_0 = arith.constant 0 : i32
    %c0_i32_1 = arith.constant 0 : i32
    return %c0_i32, %c0_i32_0 : i32, i32
  }
}

</mosaic_0001>

<bundles_post_ra>
// kernel: tpu_custom_call.1
= control target key start
LH: loop header
LB: loop body
LE: loop exit
PB: predicated region body
PF: predicated region fallthrough
CT: control target
= control target key end

     0   :  { %v326_v1 = vmov 0.0   ;;  %vm327_vm0 = vmmov 0   ;;  %vm41_vm1 = vcmask 257024   ;;  %s430_s0 = inlined_call_operand.vmem [shape: f32[4,32], index: 0, kind: input, shape index: {}]   ;;  %s431_s1 = inlined_call_operand.vmem [shape: f32[32,16], index: 1, kind: input, shape index: {}]   ;;  %s432_s2 = inlined_call_operand.vmem [shape: f32[1,16], index: 2, kind: input, shape index: {}]   ;;  %s433_s3 = inlined_call_operand.vmem [shape: f32[8,128], index: 3, kind: input, shape index: {}]   ;;  %s434_s4 = inlined_call_operand.vmem [shape: f32[8,128], index: 4, kind: input, shape index: {}]   ;;  %s435_s5 = inlined_call_operand.vmem [shape: s32[8,128], index: 5, kind: input, shape index: {}]   ;;  %s436_s6 = inlined_call_operand.vmem [shape: f32[4,1], index: 6, kind: input, shape index: {}]   ;;  %s437_s7 = inlined_call_operand.vmem [shape: f32[4,1], index: 7, kind: input, shape index: {}]   ;;  %s438_s8 = inlined_call_operand.vmem [shape: f32[4,1], index: 8, kind: input, shape index: {}]   ;;  %s439_s9 = inlined_call_operand.hbm [shape: f32[4,128], index: 9, kind: output, shape index: {}]  }
   0x1   :  { %v49_v0 = vld [vmem:[%s431_s1 + $0x18] sm:$0xff]  ;;  %280 = vmatprep.subr.mxu0 %v326_v1  ;;  %v48_v2 = vld [vmem:[%s431_s1 + $0x10] sm:$0xff]  ;;  %288 = vmatprep.mubr.msk.f32.mxu0 %vm327_vm0, %v326_v1  ;;  %v33_v3 = vld [vmem:[%s430_s0] sm:$0xf] }
   0x2   :  { %281 = vmatpush3.msra.mxu0 %v49_v0  ;;  %v40_v4 = vmul.f32 %v33_v3, %v33_v3  ;;  %v162_v5 = vld [vmem:[%s434_s4] sm:$0xff]  ;;  %v47_v6 = vld [vmem:[%s431_s1 + $0x8] sm:$0xff] }
   0x3   :  { %282 = vmatprep.subr.mxu0 %v326_v1  ;;  %298 = vrcp.f32 %v162_v5 }
   0x4   :  { %14 = vsyncpa [#allocation4], 0  ;;  %283 = vmatpush3.msra.mxu0 %v48_v2  ;;  %v42_v7 = vsel %vm41_vm1, %v40_v4, 0.0  ;;  %v46_v8 = vld [vmem:[%s431_s1] sm:$0xff]  ;;  %v45_v9 = vmul.f32 -2.0, %v33_v3  ;;  %vm50_vm2 = vcmask 261120   ;;  %v192_v25 = vlaneseq }
   0x5   :  { %284 = vmatprep.subr.mxu0 %v326_v1  ;;  %43 = vadd.xlane.f32.xlu0 %v42_v7  ;;  %v161_v10 = vld [vmem:[%s433_s3] sm:$0xff]  ;;  %vm38_vm7 = vcmask 3072   ;;  %v328_v24 = vmov inf   ;;  %vm210_vm8 = vcmask 1041409   ;;  %vm212_vm9 = vcmask 1042434  }
   0x6   :  { %285 = vmatpush3.msra.mxu0 %v47_v6  ;;  %v171_v17 = vld [vmem:[%s435_s5] sm:$0xff]  ;;  %39 = vst.msk [vmem:[#allocation2] sm:$0xf] %vm38_vm7, %v328_v24  ;;  %v406_v26 = vand.u32 127, %v192_v25  ;;  %v195_v27 = vshrl.u32 %v192_v25, 7  ;;  %vm214_vm10 = vcmask 1043459  }
   0x7   :  { %286 = vmatprep.subr.mxu0 %v326_v1  ;;  %vm173_vm3 = vcmp.eq.s32.totalorder %v171_v17, 1  ;;  %vm172_vm4 = vcmp.eq.s32.totalorder %v171_v17, 0  ;;  %vm174_vm5 = vcmp.eq.s32.totalorder %v171_v17, 2  ;;  %vm175_vm6 = vcmp.eq.s32.totalorder %v171_v17, 3  ;;  %v273_v42 = vld [vmem:[%s432_s2] ss:$0 sm:$0xff] }
   0x8   :  { %287 = vmatpush3.msra.mxu0 %v46_v8  ;;  %v196_v29 = vsub.s32 %v406_v26, %v195_v27  ;;  %vm217_vm11 = vcmask 60416   ;;  %vm134_vm12 = vcmask 125952   ;;  %v224_v48 = vld [vmem:[%s438_s8] sm:$0xf]  ;;  %v329_v54 = vmov 0   ;;  %s330_s2 = smov [#allocation3]  }
   0x9   :  { %289 = vmatmul.mubr.msk.f32.vlgmr.msra.gmra.mxu0 %vm50_vm2, %v45_v9  ;;  %300 = vrcp.f32 %v224_v48  ;;  %v221_v49 = vld [vmem:[%s436_s6] sm:$0xf]  ;;  %297 = vset.pattern.permute.xlu0 %v329_v54  ;;  %vm230_vm15 = vcmp.eq.s32.totalorder %v406_v26, 0  ;;  %vm237_vm0 = vcmp.eq.s32.totalorder %v406_v26, 1  ;;  %vm245_vm1 = vcmp.eq.s32.totalorder %v406_v26, 2  ;;  %s264_s6 = sshll.u32 %s330_s2, 4  ;;  %s265_s6 = int_to_ptr.vmem [resolvable:$true] %s264_s6 }
   0xa   :  { %v222_v50 = vld [vmem:[%s437_s7] sm:$0xf]  ;;  %296 = vset.pattern.permute.xlu1 %v329_v54  ;;  %vm254_vm2 = vcmp.eq.s32.totalorder %v406_v26, 3  ;;  %s304_s7 = scalar_lea.vmem %s265_s6, 64  ;;  %p309_p1 = scmp.lt.s32.totalorder %s265_s6, %s265_s6 }
   0xb   :  { %v223_v51 = vadd.f32 %v222_v50, %v221_v49  ;;  %p305_p0 = scmp.ne.s32.totalorder %s265_s6, %s304_s7  ;;  %p310_p2 = scmp.lt.s32.totalorder %s304_s7, %s304_s7 }
   0xd   :  { %v133_v55 = vld [vmem:[#allocation2] sm:$0xf]  ;;  %p311_p3 = por %p310_p2, %p309_p1 }
   0xf   :  { %p312_p4 = pnand %p311_p3, %p305_p0 }
  0x10   :  { %v299_v11 = vpop.eup %298 }
  0x11   :  { %v164_v12 = vmul.f32 %v299_v11, %v161_v10 }
  0x13   :  { %v165_v13 = vmax.f32 %v164_v12, 1.0 }
  0x15   :  { %v166_v14 = vmul.f32 %v165_v13, %v165_v13 }
  0x16   :  { %v301_v52 = vpop.eup %300 }
  0x17   :  { %v167_v15 = vmul.f32 %v166_v14, %v166_v14  ;;  %v226_v53 = vmul.f32 %v301_v52, %v223_v51 }
  0x19   :  { %v168_v16 = vmul.f32 %v167_v15, %v167_v15 }
  0x1b   :  { %v169_v18 = vmul.f32 %v168_v16, %v167_v15 }
  0x1d   :  { %v274_v19 = vadd.f32 -1.0, %v169_v18 }
  0x1f   :  { %v177_v20 = vsel %vm173_vm3, %v274_v19, 0.0  ;;  %v176_v21 = vsel %vm172_vm4, %v274_v19, 0.0  ;;  %v178_v22 = vsel %vm174_vm5, %v274_v19, 0.0  ;;  %v179_v23 = vsel %vm175_vm6, %v274_v19, 0.0 }
  0x20   :  { %182 = vadd.xlane.f32.xlu1 %v177_v20  ;;  %180 = vadd.xlane.f32.xlu0 %v176_v21 }
  0x24   :  { %184 = vadd.xlane.f32.xlu1 %v178_v22  ;;  %186 = vadd.xlane.f32.xlu0 %v179_v23 }
  0x8e   :  { %v44_v28 = vpop.xlane.xlu0 %43 }
  0x8f   :  { %v131_v43 = vadd.f32 %v273_v42, %v44_v28 }
  0xa9   :  { %v183_v30 = vpop.xlane.xlu1 %182  ;;  %v181_v31 = vpop.xlane.xlu0 %180 }
  0xaa   :  { %v201_v32 = vrot.slane %v183_v30, %v196_v29  ;;  %v197_v33 = vrot.slane %v181_v31, %v196_v29 }
  0xac   :  { %v211_v34 = vsel %vm210_vm8, %v201_v32, %v197_v33 }
  0xad   :  { %v185_v35 = vpop.xlane.xlu1 %184  ;;  %v187_v36 = vpop.xlane.xlu0 %186 }
  0xae   :  { %v205_v37 = vrot.slane %v185_v35, %v196_v29  ;;  %v209_v38 = vrot.slane %v187_v36, %v196_v29 }
  0xb0   :  { %v213_v39 = vsel %vm212_vm9, %v205_v37, %v211_v34 }
  0xb1   :  { %v215_v40 = vsel %vm214_vm10, %v209_v38, %v213_v39 }
  0xb2   :  { %v218_v41 = vsel %vm217_vm11, %v215_v40, 0.0 }
  0xb3   :  { %219 = vadd.xlane.f32.xlu0 %v218_v41 }
  0xc9   :  { %v120_v44 = vpop.f32.mrf.mxu0  ;;  %240 = vperm.xlu0 %297, %v226_v53  }
  0xca   :  { %v132_v45 = vadd.f32 %v131_v43, %v120_v44 }
  0xcb   :  { %v290_v46 = vpop.f32.mrf.mxu0 }
  0xcc   :  { %v135_v47 = vsel %vm134_vm12, %v132_v45, inf }
  0xcd   :  { %136 = vmin.xlane.f32.xlu1 %v135_v47 }
 0x13c   :  { %v220_v11 = vpop.xlane.xlu0 %219 }
 0x13d   :  { %v255_v22 = vsel %vm254_vm2, %v220_v11, 0.0 }
 0x144   :  { %v241_v14 = vpop.permute.xlu0 %240 }
 0x145   :  { %v243_v17 = vsel %vm237_vm0, %v241_v14, 0.0 }
 0x156   :  { %v137_v56 = vpop.xlane.xlu1 %136 }
 0x157   :  { %v138_v57 = vmin.f32 %v133_v55, %v137_v56 }
 0x159   :  { %140 = vst.msk [vmem:[#allocation2] sm:$0xf] %vm38_vm7, %v138_v57 }
 0x160   :  { %v144_v58 = vld [vmem:[#allocation2] sm:$0xf] }
 0x161   :  { %v145_v59 = vmax.f32 %v144_v58, 0.0 }
 0x163   :  { %302 = vrsqrt.f32 %v145_v59  ;;  %vm148_vm13 = vcmp.eq.f32.partialorder %v145_v59, inf  ;;  %v151_v62 = vand.u32 2147483648, %v145_v59  ;;  %vm150_vm14 = vcmp.eq.f32.partialorder %v145_v59, 0.0 }
 0x170   :  { %v303_v60 = vpop.eup %302 }
 0x171   :  { %v147_v61 = vmul.f32 %v303_v60, %v145_v59 }
 0x173   :  { %v149_v63 = vsel %vm148_vm13, %v145_v59, %v147_v61 }
 0x174   :  { %v152_v0 = vsel %vm150_vm14, %v151_v62, %v149_v63 }
 0x175   :  { %v153_v1 = vsel %vm38_vm7, %v152_v0, 0.0 }
 0x176   :  { %v154_v2 = vrot.slane %v153_v1, 4 }
 0x178   :  { %v155_v3 = vadd.f32 %v154_v2, %v153_v1 }
 0x17a   :  { %v156_v4 = vrot.slane %v155_v3, 2 }
 0x17c   :  { %v157_v5 = vadd.f32 %v156_v4, %v155_v3 }
 0x17e   :  { %v158_v6 = vrot.slane %v157_v5, 1 }
 0x180   :  { %v159_v7 = vadd.f32 %v158_v6, %v157_v5 }
 0x182   :  { %v160_v8 = vmul.f32 0.25, %v159_v7 }
 0x184   :  { %v227_v9 = vmul.f32 0.1, %v160_v8  ;;  %v246_v13 = vsub.f32 0.0, %v160_v8 }
 0x186   :  { %v228_v10 = vsub.f32 %v226_v53, %v227_v9 }
 0x188   :  { %v229_v12 = vadd.f32 %v228_v10, %v220_v11 }
 0x18a   :  { %233 = vperm.xlu1 %296, %v229_v12  }
 0x18e   :  { %249 = vperm.xlu1 %296, %v246_v13  }
 0x205   :  { %v234_v15 = vpop.permute.xlu1 %233 }
 0x206   :  { %v236_v16 = vsel %vm230_vm15, %v234_v15, 0.0 }
 0x207   :  { %v244_v18 = vadd.f32 %v243_v17, %v236_v16 }
 0x209   :  { %v250_v19 = vpop.permute.xlu1 %249 }
 0x20a   :  { %v252_v20 = vsel %vm245_vm1, %v250_v19, 0.0 }
 0x20b   :  { %v253_v21 = vadd.f32 %v252_v20, %v244_v18 }
 0x20d   :  { %v256_v23 = vadd.f32 %v255_v22, %v253_v21 }
 0x20f   :  { %257 = vst [vmem:[#allocation3] sm:$0xf] %v256_v23 }
 0x210   :  { %315 = shalt.err (!%p312_p4)
}
 0x211   :  { %267 = dma.vmem_to_hbm [thread:$0]  %s265_s6, 64, %s439_s9, [#allocation4]  }
 0x212   :  { %324 = dma.done.wait [#allocation4], 64  }
 0x213   :  { %325 = vsyncadd [#allocation4], 4294967232 }
 0x214   :  { %271 = vsyncpa [#allocation4], 1 }

</bundles_post_ra>
